<compile_context>
chip_gen: v5e
topology: v5e:2x2
jax: 0.10.0
libtpu: 0.0.40
codegen_flags: <defaults>
</compile_context>

<pallas_src>
import functools

import jax
import jax.numpy as jnp
from jax.experimental import pallas as pl
from jax.experimental.pallas import tpu as pltpu

BN_EPS = 1e-5
LANE = 128


# ---------------------------------------------------------------------------
# Fused Pallas kernel (whole MLP in one call)
# ---------------------------------------------------------------------------
def _make_fused_mlp_kernel(n_layers):
    """Refs: (x_pad, w_stack, v_stack, out).

    w_stack: (n_layers, Fpad, Fpad) bf16, zero-padded in/out dims.
    v_stack: (n_layers, 3, Fpad) f32 rows = [bias, gamma, beta] (gamma pad = 0).
    """

    def kernel(x_ref, w_ref, v_ref, o_ref):
        h = x_ref[...]                               # (N, Fpad) f32, lane-dense
        scale = None                                 # pending BN fold (prev block)
        shift = None
        for i in range(n_layers):                    # unrolled at trace time
            w = w_ref[i]                             # (Fpad, Fpad) bf16
            v = v_ref[i]                             # (3, Fpad) f32
            b = v[0:1, :]

            if scale is None:
                w_eff = w
                b_eff = b
            else:
                # Fold previous block's BN into this layer's weights:
                #   y_prev = relu_prev * scale + shift
                #   y_prev @ W + b = relu_prev @ (scale^T ⊙ W) + (shift @ W + b)
                # Moves BN's per-element cost off the (N, F) activation (VPU)
                # onto the small (F, F) weight tile.
                w_eff = (jnp.transpose(scale) * w).astype(jnp.bfloat16)
                b_eff = jnp.dot(shift.astype(jnp.bfloat16), w,
                                preferred_element_type=jnp.float32) + b

            # bf16 MXU operands, f32 accumulation (single-pass MXU on all gens).
            z = jnp.dot(h.astype(jnp.bfloat16), w_eff,
                        preferred_element_type=jnp.float32) + b_eff

            if i < n_layers - 1:
                r = jnp.maximum(z, 0.0)              # ReLU (f32, VPU)
                # One-pass train-mode BN stats (biased variance, eps=1e-5).
                # Batch axis is un-tiled => true per-batch statistics.
                mean = jnp.mean(r, axis=0, keepdims=True)          # (1, Fpad)
                mean_sq = jnp.mean(r * r, axis=0, keepdims=True)
                var = jnp.maximum(mean_sq - mean * mean, 0.0)
                inv_std = jax.lax.rsqrt(var + BN_EPS)              # EUP
                gamma = v[1:2, :]                    # padded lanes: gamma = 0
                beta = v[2:3, :]
                scale = gamma * inv_std
                shift = beta - mean * scale
                h = r                                # BN applied lazily via fold
            else:
                o_ref[...] = z                       # lane-dense (N, Fpad) store

    return kernel


# ---------------------------------------------------------------------------
# pallas_call wrapper (single fused call, full-array VMEM blocks, no grid)
# ---------------------------------------------------------------------------
@functools.partial(jax.jit, static_argnums=(3, 4))
def fused_mlp_forward(x, w_stack, v_stack, in_features, out_features):
    n = x.shape[0]
    n_layers, f_pad = w_stack.shape[0], w_stack.shape[-1]

    # Lane-dense zero-padded input; padded W rows are zero so padding is inert.
    x_pad = jnp.zeros((n, f_pad), jnp.float32).at[:, :in_features].set(
        x.astype(jnp.float32))

    # VMEM budget (matters on v7x with 64 MiB VMEM / 32 MiB scoped default).
    footprint = (x_pad.size * 4 + w_stack.size * 2 + v_stack.size * 4
                 + n * f_pad * 4)
    vmem_limit = int(min(64 << 20, max(16 << 20, 4 * footprint)))

    vmem = pl.BlockSpec(memory_space=pltpu.MemorySpace.VMEM)
    out = pl.pallas_call(
        _make_fused_mlp_kernel(n_layers),
        out_shape=jax.ShapeDtypeStruct((n, f_pad), jnp.float32),
        in_specs=[vmem, vmem, vmem],
        out_specs=vmem,
        compiler_params=pltpu.CompilerParams(vmem_limit_bytes=vmem_limit),
    )(x_pad, w_stack, v_stack)
    # Drop zero-padded lanes to recover the true output width.
    return out[:, :out_features]


# ---------------------------------------------------------------------------
# Parameter init mirroring nn.Linear U(-1/sqrt(fan_in), 1/sqrt(fan_in)) and
# BatchNorm1d gamma=1 / beta=0.  Weights are packed lane-dense (pad = 0) into
# one bf16 slab; bias/gamma/beta into one f32 slab (3 kernel inputs total).
# ---------------------------------------------------------------------------
def init_params(key, size_list):
    n_layers = len(size_list) - 1
    n_hidden = n_layers - 1
    f_pad = ((max(size_list) + LANE - 1) // LANE) * LANE

    w_stack = jnp.zeros((n_layers, f_pad, f_pad), jnp.float32)
    v_stack = jnp.zeros((n_layers, 3, f_pad), jnp.float32)
    raw = []
    for i in range(n_layers):
        fin, fout = size_list[i], size_list[i + 1]
        key, kw, kb = jax.random.split(key, 3)
        bound = 1.0 / (fin ** 0.5)
        w = jax.random.uniform(kw, (fin, fout), jnp.float32, -bound, bound)
        b = jax.random.uniform(kb, (fout,), jnp.float32, -bound, bound)
        w_stack = w_stack.at[i, :fin, :fout].set(w)
        v_stack = v_stack.at[i, 0, :fout].set(b)
        if i < n_hidden:
            # gamma = 1 on real lanes, 0 on padded lanes (kills rsqrt(eps) lanes).
            v_stack = v_stack.at[i, 1, :fout].set(1.0)
            raw.append((w, b, jnp.ones((fout,), jnp.float32),
                        jnp.zeros((fout,), jnp.float32)))
        else:
            raw.append((w, b, None, None))
    return w_stack.astype(jnp.bfloat16), v_stack, raw


# ---------------------------------------------------------------------------
# References
# ---------------------------------------------------------------------------
def ref_forward_f32(x, raw_params):
    """PyTorch-semantics reference (pure f32, unpadded, unfused)."""
    h = x
    n_layers = len(raw_params)
    for i, (w, b, gamma, beta) in enumerate(raw_params):
        h = h @ w + b
        if i < n_layers - 1:
            h = jnp.maximum(h, 0.0)
            mean = jnp.mean(h, axis=0, keepdims=True)
            var = jnp.mean((h - mean) ** 2, axis=0, keepdims=True)
            h = gamma * (h - mean) / jnp.sqrt(var + BN_EPS) + beta
    return h


def ref_forward_kernel_math(x, w_stack, v_stack, in_features, out_features):
    """Plain-JAX mimic of the exact kernel math (bf16 dots + BN fold)."""
    n = x.shape[0]
    n_layers, f_pad = w_stack.shape[0], w_stack.shape[-1]
    h = jnp.zeros((n, f_pad), jnp.float32).at[:, :in_features].set(x)
    scale = shift = None
    out = None
    for i in range(n_layers):
        w = w_stack[i]
        v = v_stack[i]
        b = v[0:1, :]
        if scale is None:
            w_eff, b_eff = w, b
        else:
            w_eff = (jnp.transpose(scale) * w).astype(jnp.bfloat16)
            b_eff = jnp.dot(shift.astype(jnp.bfloat16), w,
                            preferred_element_type=jnp.float32) + b
        z = jnp.dot(h.astype(jnp.bfloat16), w_eff,
                    preferred_element_type=jnp.float32) + b_eff
        if i < n_layers - 1:
            r = jnp.maximum(z, 0.0)
            mean = jnp.mean(r, axis=0, keepdims=True)
            var = jnp.maximum(jnp.mean(r * r, axis=0, keepdims=True)
                              - mean * mean, 0.0)
            inv_std = jax.lax.rsqrt(var + BN_EPS)
            gamma, beta = v[1:2, :], v[2:3, :]
            scale = gamma * inv_std
            shift = beta - mean * scale
            h = r
        else:
            out = z
    return out[:, :out_features]


# ---------------------------------------------------------------------------
if __name__ == "__main__":
    # Small, module-consistent shapes: size_list = [32, 64, 64, 10], batch = 8
    size_list = [32, 64, 64, 10]
    batch = 8

    key = jax.random.PRNGKey(0)
    kp, kx = jax.random.split(key)
    w_stack, v_stack, raw_params = init_params(kp, size_list)
    x = jax.random.normal(kx, (batch, size_list[0]), jnp.float32)

    out = fused_mlp_forward(x, w_stack, v_stack, size_list[0], size_list[-1])
    out = jax.block_until_ready(out)

    assert out.shape == (batch, size_list[-1]), out.shape
    assert out.dtype == jnp.float32, out.dtype

    # Tight check against a plain-JAX mimic of the exact kernel math.
    ref_k = ref_forward_kernel_math(x, w_stack, v_stack,
                                    size_list[0], size_list[-1])
    assert jnp.allclose(out, ref_k, rtol=2e-3, atol=2e-3), float(
        jnp.max(jnp.abs(out - ref_k)))

    # Loose check against the f32 PyTorch-semantics reference (bf16 MXU inputs
    # introduce ~1e-2 absolute drift at these magnitudes).
    ref_f = ref_forward_f32(x, raw_params)
    assert jnp.allclose(out, ref_f, rtol=5e-2, atol=5e-2), float(
        jnp.max(jnp.abs(out - ref_f)))

    print("KERNEL_OK")
</pallas_src>

<mosaic_0001>
module attributes {stable_mosaic.version = 11 : i64} {
  func.func @kernel(%arg0: memref<8x128xf32, #tpu.memory_space<vmem>>, %arg1: memref<3x128x128xbf16, #tpu.memory_space<vmem>>, %arg2: memref<3x3x128xf32, #tpu.memory_space<vmem>>, %arg3: memref<8x128xf32, #tpu.memory_space<vmem>>) attributes {dimension_semantics = [], scalar_prefetch = 0 : i64, scratch_operands = 0 : i64, tpu.core_type = #tpu.core_type<tc>} {
    %c0 = arith.constant 0 : index
    %c0_0 = arith.constant 0 : index
    %0 = vector.load %arg0[%c0, %c0_0] : memref<8x128xf32, #tpu.memory_space<vmem>>, vector<8x128xf32>
    %c0_1 = arith.constant 0 : index
    %c0_2 = arith.constant 0 : index
    %c0_3 = arith.constant 0 : index
    %1 = vector.load %arg1[%c0_1, %c0_2, %c0_3] : memref<3x128x128xbf16, #tpu.memory_space<vmem>>, vector<1x128x128xbf16>
    %2 = vector.shape_cast %1 : vector<1x128x128xbf16> to vector<128x128xbf16>
    %c0_4 = arith.constant 0 : index
    %c0_5 = arith.constant 0 : index
    %c0_6 = arith.constant 0 : index
    %3 = vector.load %arg2[%c0_4, %c0_5, %c0_6] : memref<3x3x128xf32, #tpu.memory_space<vmem>>, vector<1x3x128xf32>
    %4 = vector.shape_cast %3 : vector<1x3x128xf32> to vector<3x128xf32>
    %5 = vector.extract_strided_slice %4 {offsets = [0, 0], sizes = [1, 128], strides = [1, 1]} : vector<3x128xf32> to vector<1x128xf32>
    %6 = arith.truncf %0 : vector<8x128xf32> to vector<8x128xbf16>
    %cst = arith.constant dense<0.000000e+00> : vector<8x128xf32>
    %7 = tpu.matmul %6, %2, %cst {dimension_numbers = #tpu.dot_dimension_numbers<[1], [0], [0], [1], [0, 0, 1, 1], [], []>} : vector<8x128xbf16>, vector<128x128xbf16>, vector<8x128xf32> -> vector<8x128xf32>
    %8 = vector.broadcast %5 : vector<1x128xf32> to vector<8x128xf32>
    %9 = arith.addf %7, %8 : vector<8x128xf32>
    %cst_7 = arith.constant 0.000000e+00 : f32
    %10 = vector.broadcast %cst_7 : f32 to vector<8x128xf32>
    %11 = arith.maximumf %9, %10 : vector<8x128xf32>
    %cst_8 = arith.constant dense<0.000000e+00> : vector<128xf32>
    %12 = vector.multi_reduction <add>, %11, %cst_8 [0] : vector<8x128xf32> to vector<128xf32>
    %13 = vector.shape_cast %12 : vector<128xf32> to vector<1x128xf32>
    %cst_9 = arith.constant 8.000000e+00 : f32
    %14 = vector.broadcast %cst_9 : f32 to vector<1x128xf32>
    %15 = arith.divf %13, %14 : vector<1x128xf32>
    %16 = arith.mulf %11, %11 : vector<8x128xf32>
    %cst_10 = arith.constant dense<0.000000e+00> : vector<128xf32>
    %17 = vector.multi_reduction <add>, %16, %cst_10 [0] : vector<8x128xf32> to vector<128xf32>
    %18 = vector.shape_cast %17 : vector<128xf32> to vector<1x128xf32>
    %cst_11 = arith.constant 8.000000e+00 : f32
    %19 = vector.broadcast %cst_11 : f32 to vector<1x128xf32>
    %20 = arith.divf %18, %19 : vector<1x128xf32>
    %21 = arith.mulf %15, %15 : vector<1x128xf32>
    %22 = arith.subf %20, %21 : vector<1x128xf32>
    %cst_12 = arith.constant 0.000000e+00 : f32
    %23 = vector.broadcast %cst_12 : f32 to vector<1x128xf32>
    %24 = arith.maximumf %22, %23 : vector<1x128xf32>
    %cst_13 = arith.constant 9.99999974E-6 : f32
    %25 = vector.broadcast %cst_13 : f32 to vector<1x128xf32>
    %26 = arith.addf %24, %25 : vector<1x128xf32>
    %27 = math.rsqrt %26 : vector<1x128xf32>
    %28 = vector.extract_strided_slice %4 {offsets = [1, 0], sizes = [1, 128], strides = [1, 1]} : vector<3x128xf32> to vector<1x128xf32>
    %29 = vector.extract_strided_slice %4 {offsets = [2, 0], sizes = [1, 128], strides = [1, 1]} : vector<3x128xf32> to vector<1x128xf32>
    %30 = arith.mulf %28, %27 : vector<1x128xf32>
    %31 = arith.mulf %15, %30 : vector<1x128xf32>
    %32 = arith.subf %29, %31 : vector<1x128xf32>
    %c1 = arith.constant 1 : index
    %c0_14 = arith.constant 0 : index
    %c0_15 = arith.constant 0 : index
    %33 = vector.load %arg1[%c1, %c0_14, %c0_15] : memref<3x128x128xbf16, #tpu.memory_space<vmem>>, vector<1x128x128xbf16>
    %34 = vector.shape_cast %33 : vector<1x128x128xbf16> to vector<128x128xbf16>
    %c1_16 = arith.constant 1 : index
    %c0_17 = arith.constant 0 : index
    %c0_18 = arith.constant 0 : index
    %35 = vector.load %arg2[%c1_16, %c0_17, %c0_18] : memref<3x3x128xf32, #tpu.memory_space<vmem>>, vector<1x3x128xf32>
    %36 = vector.shape_cast %35 : vector<1x3x128xf32> to vector<3x128xf32>
    %37 = vector.extract_strided_slice %36 {offsets = [0, 0], sizes = [1, 128], strides = [1, 1]} : vector<3x128xf32> to vector<1x128xf32>
    %38 = tpu.transpose %30, [1, 0] : vector<1x128xf32> -> vector<128x1xf32>
    %39 = arith.extf %34 : vector<128x128xbf16> to vector<128x128xf32>
    %40 = vector.broadcast %38 : vector<128x1xf32> to vector<128x128xf32>
    %41 = arith.mulf %40, %39 : vector<128x128xf32>
    %42 = arith.truncf %41 : vector<128x128xf32> to vector<128x128xbf16>
    %43 = arith.truncf %32 : vector<1x128xf32> to vector<1x128xbf16>
    %cst_19 = arith.constant dense<0.000000e+00> : vector<1x128xf32>
    %44 = tpu.matmul %43, %34, %cst_19 {dimension_numbers = #tpu.dot_dimension_numbers<[1], [0], [0], [1], [0, 0, 1, 1], [], []>} : vector<1x128xbf16>, vector<128x128xbf16>, vector<1x128xf32> -> vector<1x128xf32>
    %45 = arith.addf %44, %37 : vector<1x128xf32>
    %46 = arith.truncf %11 : vector<8x128xf32> to vector<8x128xbf16>
    %cst_20 = arith.constant dense<0.000000e+00> : vector<8x128xf32>
    %47 = tpu.matmul %46, %42, %cst_20 {dimension_numbers = #tpu.dot_dimension_numbers<[1], [0], [0], [1], [0, 0, 1, 1], [], []>} : vector<8x128xbf16>, vector<128x128xbf16>, vector<8x128xf32> -> vector<8x128xf32>
    %48 = vector.broadcast %45 : vector<1x128xf32> to vector<8x128xf32>
    %49 = arith.addf %47, %48 : vector<8x128xf32>
    %cst_21 = arith.constant 0.000000e+00 : f32
    %50 = vector.broadcast %cst_21 : f32 to vector<8x128xf32>
    %51 = arith.maximumf %49, %50 : vector<8x128xf32>
    %cst_22 = arith.constant dense<0.000000e+00> : vector<128xf32>
    %52 = vector.multi_reduction <add>, %51, %cst_22 [0] : vector<8x128xf32> to vector<128xf32>
    %53 = vector.shape_cast %52 : vector<128xf32> to vector<1x128xf32>
    %cst_23 = arith.constant 8.000000e+00 : f32
    %54 = vector.broadcast %cst_23 : f32 to vector<1x128xf32>
    %55 = arith.divf %53, %54 : vector<1x128xf32>
    %56 = arith.mulf %51, %51 : vector<8x128xf32>
    %cst_24 = arith.constant dense<0.000000e+00> : vector<128xf32>
    %57 = vector.multi_reduction <add>, %56, %cst_24 [0] : vector<8x128xf32> to vector<128xf32>
    %58 = vector.shape_cast %57 : vector<128xf32> to vector<1x128xf32>
    %cst_25 = arith.constant 8.000000e+00 : f32
    %59 = vector.broadcast %cst_25 : f32 to vector<1x128xf32>
    %60 = arith.divf %58, %59 : vector<1x128xf32>
    %61 = arith.mulf %55, %55 : vector<1x128xf32>
    %62 = arith.subf %60, %61 : vector<1x128xf32>
    %cst_26 = arith.constant 0.000000e+00 : f32
    %63 = vector.broadcast %cst_26 : f32 to vector<1x128xf32>
    %64 = arith.maximumf %62, %63 : vector<1x128xf32>
    %cst_27 = arith.constant 9.99999974E-6 : f32
    %65 = vector.broadcast %cst_27 : f32 to vector<1x128xf32>
    %66 = arith.addf %64, %65 : vector<1x128xf32>
    %67 = math.rsqrt %66 : vector<1x128xf32>
    %68 = vector.extract_strided_slice %36 {offsets = [1, 0], sizes = [1, 128], strides = [1, 1]} : vector<3x128xf32> to vector<1x128xf32>
    %69 = vector.extract_strided_slice %36 {offsets = [2, 0], sizes = [1, 128], strides = [1, 1]} : vector<3x128xf32> to vector<1x128xf32>
    %70 = arith.mulf %68, %67 : vector<1x128xf32>
    %71 = arith.mulf %55, %70 : vector<1x128xf32>
    %72 = arith.subf %69, %71 : vector<1x128xf32>
    %c2 = arith.constant 2 : index
    %c0_28 = arith.constant 0 : index
    %c0_29 = arith.constant 0 : index
    %73 = vector.load %arg1[%c2, %c0_28, %c0_29] : memref<3x128x128xbf16, #tpu.memory_space<vmem>>, vector<1x128x128xbf16>
    %74 = vector.shape_cast %73 : vector<1x128x128xbf16> to vector<128x128xbf16>
    %c2_30 = arith.constant 2 : index
    %c0_31 = arith.constant 0 : index
    %c0_32 = arith.constant 0 : index
    %75 = vector.load %arg2[%c2_30, %c0_31, %c0_32] : memref<3x3x128xf32, #tpu.memory_space<vmem>>, vector<1x3x128xf32>
    %76 = vector.shape_cast %75 : vector<1x3x128xf32> to vector<3x128xf32>
    %77 = vector.extract_strided_slice %76 {offsets = [0, 0], sizes = [1, 128], strides = [1, 1]} : vector<3x128xf32> to vector<1x128xf32>
    %78 = tpu.transpose %70, [1, 0] : vector<1x128xf32> -> vector<128x1xf32>
    %79 = arith.extf %74 : vector<128x128xbf16> to vector<128x128xf32>
    %80 = vector.broadcast %78 : vector<128x1xf32> to vector<128x128xf32>
    %81 = arith.mulf %80, %79 : vector<128x128xf32>
    %82 = arith.truncf %81 : vector<128x128xf32> to vector<128x128xbf16>
    %83 = arith.truncf %72 : vector<1x128xf32> to vector<1x128xbf16>
    %cst_33 = arith.constant dense<0.000000e+00> : vector<1x128xf32>
    %84 = tpu.matmul %83, %74, %cst_33 {dimension_numbers = #tpu.dot_dimension_numbers<[1], [0], [0], [1], [0, 0, 1, 1], [], []>} : vector<1x128xbf16>, vector<128x128xbf16>, vector<1x128xf32> -> vector<1x128xf32>
    %85 = arith.addf %84, %77 : vector<1x128xf32>
    %86 = arith.truncf %51 : vector<8x128xf32> to vector<8x128xbf16>
    %cst_34 = arith.constant dense<0.000000e+00> : vector<8x128xf32>
    %87 = tpu.matmul %86, %82, %cst_34 {dimension_numbers = #tpu.dot_dimension_numbers<[1], [0], [0], [1], [0, 0, 1, 1], [], []>} : vector<8x128xbf16>, vector<128x128xbf16>, vector<8x128xf32> -> vector<8x128xf32>
    %88 = vector.broadcast %85 : vector<1x128xf32> to vector<8x128xf32>
    %89 = arith.addf %87, %88 : vector<8x128xf32>
    %c0_35 = arith.constant 0 : index
    %c0_36 = arith.constant 0 : index
    %90 = vector.load %arg3[%c0_35, %c0_36] : memref<8x128xf32, #tpu.memory_space<vmem>>, vector<8x128xf32>
    tpu.vector_store %arg3[%c0_35, %c0_36], %89 {strides = array<i32>} : memref<8x128xf32, #tpu.memory_space<vmem>>, vector<8x128xf32>,
    return
  }
}

</mosaic_0001>

<bundles_post_ra>
// kernel: fused_mlp_forward.1
= control target key start
LH: loop header
LB: loop body
LE: loop exit
PB: predicated region body
PF: predicated region fallthrough
CT: control target
= control target key end

     0   :  { %8 = vsyncpa [#allocation3], 0  ;;  %s983_s0 = inlined_call_operand.vmem [shape: f32[8,128], index: 0, kind: input, shape index: {}]   ;;  %s984_s1 = inlined_call_operand.hbm [shape: bf16[3,128,128], index: 1, kind: input, shape index: {}]   ;;  %s985_s2 = inlined_call_operand.vmem [shape: f32[3,3,128], index: 2, kind: input, shape index: {}]   ;;  %s986_s3 = inlined_call_operand.hbm [shape: f32[8,128], index: 3, kind: output, shape index: {}]  }
   0x1   :  { %9 = vsyncpa [#allocation4], 0  ;;  %s16_s14 = sshll.u32 %s984_s1, 4  ;;  %s907_s15 = smov [#allocation2]   ;;  %s17_s14 = int_to_ptr.hbm [resolvable:$true] %s16_s14 }
   0x2   :  { %s18_s16 = sshll.u32 %s907_s15, 4  ;;  %s908_s17 = smov 64   ;;  %s19_s16 = int_to_ptr.vmem [resolvable:$true] %s18_s16 }
   0x3   :  { %s909_s18 = smov 4  }
   0x4   :  { %24 = dma.hbm_to_vmem [thread:$0]  %s17_s14, 3072, %s19_s16, [#allocation3], %s908_s17, %s908_s17, %s909_s18  }
   0x5   :  { %903 = dma.done.wait [#allocation3], 3072  }
   0x6   :  { %904 = vsyncadd [#allocation3], 4294964224  ;;  %v822_v0 = vld [vmem:[#allocation2 + $0x38] sm:$0xff]  ;;  %v821_v1 = vld [vmem:[#allocation2 + $0x30] sm:$0xff]  ;;  %v910_v13 = vmov 8.0   ;;  %s912_s25 = smov [#allocation5]  }
   0x7   :  { %99 = vmatpush.bf16.msra.mxu0 %v822_v0  ;;  %v820_v2 = vld [vmem:[#allocation2 + $0x28] sm:$0xff]  ;;  %v819_v3 = vld [vmem:[#allocation2 + $0x20] sm:$0xff]  ;;  %v818_v4 = vld [vmem:[#allocation2 + $0x18] sm:$0xff]  ;;  %849 = vrcp.f32 %v910_v13  ;;  %s705_s26 = sshll.u32 %s912_s25, 4  ;;  %s707_s29 = sshll.u32 %s986_s3, 4  ;;  %s706_s26 = int_to_ptr.vmem [resolvable:$true] %s705_s26  ;;  %s708_s29 = int_to_ptr.hbm [resolvable:$true] %s707_s29 }
   0x8   :  { %v817_v5 = vld [vmem:[#allocation2 + $0x10] sm:$0xff]  ;;  %v816_v6 = vld [vmem:[#allocation2 + $0x8] sm:$0xff]  ;;  %v815_v7 = vld [vmem:[#allocation2] sm:$0xff] }
   0x9   :  { %v31_v8 = vld [vmem:[%s983_s0] sm:$0xff]  ;;  %v830_v10 = vld [vmem:[#allocation2 + $0x78] sm:$0xff]  ;;  %v829_v11 = vld [vmem:[#allocation2 + $0x70] sm:$0xff] }
   0xa   :  { %v49_v9 = vpack.c.bf16 %v31_v8, %v31_v8  ;;  %381 = vmatpush.bf16.msra.mxu1 %v830_v10  ;;  %v828_v12 = vld [vmem:[#allocation2 + $0x68] sm:$0xff]  ;;  %v827_v14 = vld [vmem:[#allocation2 + $0x60] sm:$0xff]  ;;  %v826_v18 = vld [vmem:[#allocation2 + $0x58] sm:$0xff]  ;;  %v911_v10 = vmov 0  }
   0xb   :  { %100 = vmatpush.bf16.msra.mxu0 %v821_v1  ;;  %v48_v15 = vld [vmem:[%s985_s2] sm:$0x7]  ;;  %v825_v22 = vld [vmem:[#allocation2 + $0x50] sm:$0xff]  ;;  %v824_v41 = vld [vmem:[#allocation2 + $0x48] sm:$0xff]  ;;  %847 = vset.pattern.permute.xlu1 %v911_v10 }
   0xc   :  { %v50_v17 = vperm.slane %v48_v15, 0  ;;  %v823_v44 = vld [vmem:[#allocation2 + $0x40] sm:$0xff]  ;;  %848 = vset.pattern.permute.xlu2 %v911_v10 }
   0xd   :  { %v850_v16 = vpop.eup %849 }
   0xe   :  { %382 = vmatpush.bf16.msra.mxu1 %v829_v11  ;;  %v120_v19 = vmul.f32 8.0, %v850_v16  ;;  %vm124_vm0 = vweird.f32 %v850_v16 }
   0xf   :  { %101 = vmatpush.bf16.msra.mxu0 %v820_v2 }
  0x10   :  { %v121_v23 = vsub.f32 1.0, %v120_v19 }
  0x12   :  { %383 = vmatpush.bf16.msra.mxu1 %v828_v12  ;;  %v122_v27 = vmul.f32 %v850_v16, %v121_v23 }
  0x13   :  { %102 = vmatpush.bf16.msra.mxu0 %v819_v3 }
  0x14   :  { %v123_v33 = vadd.f32 %v850_v16, %v122_v27  ;;  %v169_v27 = vld [vmem:[#allocation2 + $0x74] sm:$0xff]  }
  0x16   :  { %384 = vmatpush.bf16.msra.mxu1 %v827_v14  ;;  %v948_v38 = vsel %vm124_vm0, %v850_v16, %v123_v33 }
  0x17   :  { %103 = vmatpush.bf16.msra.mxu0 %v818_v4 }
  0x1a   :  { %385 = vmatpush.bf16.msra.mxu1 %v826_v18 }
  0x1b   :  { %104 = vmatpush.bf16.msra.mxu0 %v817_v5 }
  0x1e   :  { %386 = vmatpush.bf16.msra.mxu1 %v825_v22 }
  0x1f   :  { %105 = vmatpush.bf16.msra.mxu0 %v816_v6 }
  0x22   :  { %387 = vmatpush.bf16.msra.mxu1 %v824_v41 }
  0x23   :  { %106 = vmatpush.bf16.msra.mxu0 %v815_v7 }
  0x26   :  { %107 = vmatmul.bf16.vlgmr.msra.gmra.mxu0 %v49_v9  ;;  %388 = vmatpush.bf16.msra.mxu1 %v823_v44 }
  0xa3   :  { %v108_v20 = vpop.f32.mrf.mxu0 }
  0xa4   :  { %v109_v21 = vadd.f32 %v108_v20, %v50_v17 }
  0xa6   :  { %v942_v24 = vmax.f32 %v109_v21, 0.0 }
  0xa8   :  { %v113_v25 = vrot.slane %v942_v24, 4  ;;  %v127_v26 = vmul.f32 %v942_v24, %v942_v24 }
  0xaa   :  { %v114_v28 = vadd.f32 %v113_v25, %v942_v24  ;;  %v128_v29 = vrot.slane %v127_v26, 4 }
  0xab   :  { %v110_v30 = vpop.f32.mrf.mxu0 }
  0xac   :  { %v115_v31 = vrot.slane %v114_v28, 2  ;;  %v129_v32 = vadd.f32 %v128_v29, %v127_v26  ;;  %v954_v26 = vld [vmem:[#allocation2 + $0x7c] sm:$0xff]   ;;  %v223_v29 = vunpack.c.h.bf16 %v169_v27 }
  0xad   :  { %v224_v30 = vunpack.c.l.bf16 %v954_v26 }
  0xae   :  { %v130_v34 = vrot.slane %v129_v32, 2  ;;  %v116_v35 = vadd.f32 %v115_v31, %v114_v28  ;;  %v168_v28 = vld [vmem:[#allocation2 + $0x70] sm:$0xf] }
  0xb0   :  { %v131_v36 = vadd.f32 %v130_v34, %v129_v32  ;;  %v117_v37 = vrot.slane %v116_v35, 1  ;;  %v221_v32 = vunpack.c.l.bf16 %v168_v28  ;;  %v749_v28 = vld [vmem:[%s985_s2 + $0x4] sm:$0x7] }
  0xb2   :  { %v132_v39 = vrot.slane %v131_v36, 1  ;;  %v118_v40 = vadd.f32 %v117_v37, %v116_v35  ;;  %v222_v35 = vunpack.c.l.bf16 %v169_v27  ;;  %v837_v27 = vld [vmem:[#allocation2 + $0xb0] sm:$0xff] }
  0xb4   :  { %v126_v42 = vmul.f32 %v948_v38, %v118_v40  ;;  %v133_v43 = vadd.f32 %v132_v39, %v131_v36  ;;  %v166_v39 = vld [vmem:[#allocation2 + $0x68] sm:$0xff]  }
  0xb5   :  { %v220_v41 = vunpack.c.h.bf16 %v166_v39  ;;  %v219_v44 = vunpack.c.l.bf16 %v166_v39  ;;  %v833_v39 = vld [vmem:[#allocation2 + $0x90] sm:$0xff] }
  0xb6   :  { %v134_v45 = vmul.f32 %v133_v43, %v948_v38  ;;  %v135_v46 = vmul.f32 %v126_v42, %v126_v42 }
  0xb8   :  { %v136_v47 = vsub.f32 %v134_v45, %v135_v46  ;;  %v164_v45 = vld [vmem:[#allocation2 + $0x60] sm:$0xff]  }
  0xba   :  { %v137_v48 = vmax.f32 %v136_v47, 0.0  ;;  %v218_v47 = vunpack.c.h.bf16 %v164_v45 }
  0xbc   :  { %v138_v49 = vadd.f32 1e-05, %v137_v48 }
  0xbe   :  { %851 = vrsqrt.f32 %v138_v49  ;;  %vm145_vm2 = vweird.f32 %v138_v49 }
  0xc4   :  { %v852_v50 = vpop.eup %851 }
  0xc5   :  { %v140_v51 = vmul.f32 %v852_v50, %v138_v49  ;;  %vm146_vm1 = vweird.f32 %v852_v50 }
  0xc6   :  { %vm147_vm3 = vmor %vm145_vm2, %vm146_vm1 }
  0xc7   :  { %v141_v52 = vmul.f32 %v852_v50, %v140_v51  ;;  %v217_v51 = vunpack.c.l.bf16 %v164_v45 }
  0xc9   :  { %v142_v53 = vmul.f32 0.5, %v141_v52  ;;  %v162_v52 = vld [vmem:[#allocation2 + $0x58] sm:$0xff]  }
  0xcb   :  { %v143_v54 = vsub.f32 1.5, %v142_v53 }
  0xcd   :  { %v144_v55 = vmul.f32 %v852_v50, %v143_v54 }
  0xcf   :  { %v148_v56 = vsel %vm147_vm3, %v852_v50, %v144_v55  ;;  %v216_v55 = vunpack.c.h.bf16 %v162_v52 }
  0xd0   :  { %v149_v57 = vmul.f32 %v148_v56, %v48_v15 }
  0xd2   :  { %v175_v58 = vrot.slane %v149_v57, 1  ;;  %v150_v59 = vmul.f32 %v149_v57, %v126_v42 }
  0xd4   :  { %177 = vxpose.xlu0.b32.start.end [1/1] (short) %v175_v58, 128  ;;  %v152_v60 = vrot.slane %v150_v59, 7  ;;  %v215_v58 = vunpack.c.l.bf16 %v162_v52  ;;  %v160_v59 = vld [vmem:[#allocation2 + $0x50] sm:$0xff]   ;;  %v832_v52 = vld [vmem:[#allocation2 + $0x88] sm:$0xff] }
  0xd6   :  { %v154_v61 = vsub.f32 %v48_v15, %v152_v60 }
  0xd8   :  { %v329_v62 = vpack.c.bf16 %v154_v61, %v154_v61  ;;  %v214_v61 = vunpack.c.h.bf16 %v160_v59 }
  0xda   :  { %v331_v63 = vrot.slane %v329_v62, 1 }
  0xdc   :  { %389 = vmatmul.bf16.vlgmr.msra.gmra.mxu1 %v331_v63 }
 0x13b   :  { %846 = vset.pattern.permute.xlu0 %v911_v10 }
 0x159   :  { %v952_v0 = vpop.f32.mrf.mxu1 }
 0x161   :  { %v392_v1 = vpop.f32.mrf.mxu1 }
 0x178   :  { %v193_v2 = vpop.trf.xlu0 }
 0x180   :  { %v194_v3 = vpop.trf.xlu0 }
 0x188   :  { %v195_v4 = vpop.trf.xlu0 }
 0x190   :  { %v196_v5 = vpop.trf.xlu0 }
 0x198   :  { %v197_v6 = vpop.trf.xlu0 }
 0x1a0   :  { %v198_v7 = vpop.trf.xlu0 }
 0x1a8   :  { %v199_v8 = vpop.trf.xlu0 }
 0x1b0   :  { %v200_v9 = vpop.trf.xlu0 }
 0x1b8   :  { %v201_v11 = vpop.trf.xlu0 }
 0x1c0   :  { %v202_v12 = vpop.trf.xlu0 }
 0x1c8   :  { %v203_v13 = vpop.trf.xlu0 }
 0x1d0   :  { %v204_v14 = vpop.trf.xlu0 }
 0x1d8   :  { %v205_v15 = vpop.trf.xlu0 }
 0x1d9   :  { %287 = vperm.xlu1 %847, %v205_v15  }
 0x1e0   :  { %v206_v16 = vpop.trf.xlu0 }
 0x1e1   :  { %282 = vperm.xlu1 %847, %v204_v14   ;;  %292 = vperm.xlu2 %848, %v206_v16   ;;  %v156_v14 = vld [vmem:[#allocation2 + $0x40] sm:$0xff]  }
 0x1e2   :  { %v209_v16 = vunpack.c.l.bf16 %v156_v14 }
 0x1e8   :  { %v207_v17 = vpop.trf.xlu0 }
 0x1e9   :  { %272 = vperm.xlu1 %847, %v202_v12   ;;  %277 = vperm.xlu2 %848, %v203_v13  }
 0x1ea   :  { %297 = vperm.xlu0 %846, %v207_v17   ;;  %v210_v17 = vunpack.c.h.bf16 %v156_v14 }
 0x1f0   :  { %v208_v18 = vpop.trf.xlu0 }
 0x1f1   :  { %267 = vperm.xlu2 %848, %v201_v11   ;;  %302 = vperm.xlu1 %847, %v208_v18  }
 0x1f9   :  { %257 = vperm.xlu2 %848, %v199_v8   ;;  %262 = vperm.xlu1 %847, %v200_v9  }
 0x201   :  { %247 = vperm.xlu2 %848, %v197_v6   ;;  %252 = vperm.xlu1 %847, %v198_v7  }
 0x209   :  { %237 = vperm.xlu2 %848, %v195_v4   ;;  %242 = vperm.xlu1 %847, %v196_v5  }
 0x211   :  { %227 = vperm.xlu2 %848, %v193_v2   ;;  %232 = vperm.xlu1 %847, %v194_v3   ;;  %v213_v2 = vunpack.c.l.bf16 %v160_v59  ;;  %v158_v3 = vld [vmem:[#allocation2 + $0x48] sm:$0xff]  }
 0x212   :  { %v211_v8 = vunpack.c.l.bf16 %v158_v3  ;;  %v212_v9 = vunpack.c.h.bf16 %v158_v3 }
 0x23b   :  { %v293_v19 = vpop.permute.xlu2 %292 }
 0x23c   :  { %v318_v43 = vmul.f32 %v293_v19, %v222_v35  ;;  %v834_v35 = vld [vmem:[#allocation2 + $0x98] sm:$0xff] }
 0x243   :  { %v278_v21 = vpop.permute.xlu2 %277 }
 0x244   :  { %v315_v50 = vmul.f32 %v278_v21, %v219_v44 }
 0x24b   :  { %v288_v20 = vpop.permute.xlu1 %287  ;;  %v268_v23 = vpop.permute.xlu2 %267 }
 0x24c   :  { %v317_v40 = vmul.f32 %v288_v20, %v221_v32  ;;  %v313_v57 = vmul.f32 %v268_v23, %v217_v51  ;;  %v394_v23 = vpack.c.bf16 %v942_v24, %v942_v24 }
 0x24e   :  { %v327_v48 = vpack.c.bf16 %v318_v43, %v317_v40 }
 0x253   :  { %v283_v22 = vpop.permute.xlu1 %282  ;;  %v258_v33 = vpop.permute.xlu2 %257 }
 0x254   :  { %v316_v46 = vmul.f32 %v283_v22, %v220_v41  ;;  %v311_v1 = vmul.f32 %v258_v33, %v215_v58 }
 0x256   :  { %v326_v56 = vpack.c.bf16 %v316_v46, %v315_v50 }
 0x25b   :  { %v273_v25 = vpop.permute.xlu1 %272  ;;  %v248_v53 = vpop.permute.xlu2 %247 }
 0x25c   :  { %v298_v31 = vpop.permute.xlu0 %297  ;;  %v314_v54 = vmul.f32 %v273_v25, %v218_v47  ;;  %v309_v7 = vmul.f32 %v248_v53, %v213_v2  ;;  %v838_v25 = vld [vmem:[#allocation2 + $0xb8] sm:$0xff] }
 0x25d   :  { %v319_v36 = vmul.f32 %v298_v31, %v223_v29  ;;  %671 = vmatpush.bf16.msra.mxu3 %v838_v25  ;;  %v836_v29 = vld [vmem:[#allocation2 + $0xa8] sm:$0xff]  ;;  %v835_v31 = vld [vmem:[#allocation2 + $0xa0] sm:$0xff] }
 0x25e   :  { %v325_v62 = vpack.c.bf16 %v314_v54, %v313_v57 }
 0x261   :  { %672 = vmatpush.bf16.msra.mxu3 %v837_v27 }
 0x263   :  { %v303_v34 = vpop.permute.xlu1 %302  ;;  %v238_v6 = vpop.permute.xlu2 %237 }
 0x264   :  { %v320_v37 = vmul.f32 %v303_v34, %v224_v30  ;;  %v307_v12 = vmul.f32 %v238_v6, %v211_v8  ;;  %v391_v30 = vadd.f32 %v749_v28, %v952_v0 }
 0x265   :  { %673 = vmatpush.bf16.msra.mxu3 %v836_v29 }
 0x266   :  { %v328_v42 = vpack.c.bf16 %v320_v37, %v319_v36  ;;  %v395_v32 = vperm.slane %v391_v30, 0  ;;  %v454_v30 = vld [vmem:[#allocation2 + $0xa0] sm:$0xff]  }
 0x268   :  { %396 = vmatpush.bf16.msra.mxu2 %v328_v42 }
 0x269   :  { %674 = vmatpush.bf16.msra.mxu3 %v835_v31  ;;  %v507_v31 = vunpack.c.l.bf16 %v454_v30 }
 0x26b   :  { %v263_v49 = vpop.permute.xlu1 %262  ;;  %v228_v18 = vpop.permute.xlu2 %227 }
 0x26c   :  { %397 = vmatpush.bf16.msra.mxu2 %v327_v48  ;;  %v312_v60 = vmul.f32 %v263_v49, %v216_v55  ;;  %v305_v20 = vmul.f32 %v228_v18, %v209_v16  ;;  %v831_v55 = vld [vmem:[#allocation2 + $0x80] sm:$0xff] }
 0x26d   :  { %675 = vmatpush.bf16.msra.mxu3 %v834_v35 }
 0x26e   :  { %v324_v5 = vpack.c.bf16 %v312_v60, %v311_v1 }
 0x270   :  { %398 = vmatpush.bf16.msra.mxu2 %v326_v56 }
 0x271   :  { %676 = vmatpush.bf16.msra.mxu3 %v833_v39  ;;  %v452_v39 = vld [vmem:[#allocation2 + $0x98] sm:$0xff]  }
 0x273   :  { %v253_v63 = vpop.permute.xlu1 %252 }
 0x274   :  { %399 = vmatpush.bf16.msra.mxu2 %v325_v62  ;;  %v310_v4 = vmul.f32 %v253_v63, %v214_v61 }
 0x275   :  { %677 = vmatpush.bf16.msra.mxu3 %v832_v52 }
 0x276   :  { %v323_v10 = vpack.c.bf16 %v310_v4, %v309_v7 }
 0x278   :  { %400 = vmatpush.bf16.msra.mxu2 %v324_v5 }
 0x279   :  { %678 = vmatpush.bf16.msra.mxu3 %v831_v55 }
 0x27b   :  { %v243_v11 = vpop.permute.xlu1 %242 }
 0x27c   :  { %v308_v13 = vmul.f32 %v243_v11, %v212_v9  ;;  %401 = vmatpush.bf16.msra.mxu2 %v323_v10 }
 0x27e   :  { %v322_v15 = vpack.c.bf16 %v308_v13, %v307_v12 }
 0x280   :  { %402 = vmatpush.bf16.msra.mxu2 %v322_v15 }
 0x283   :  { %v233_v19 = vpop.permute.xlu1 %232 }
 0x284   :  { %v306_v21 = vmul.f32 %v233_v19, %v210_v17 }
 0x286   :  { %v321_v22 = vpack.c.bf16 %v306_v21, %v305_v20 }
 0x288   :  { %403 = vmatpush.bf16.msra.mxu2 %v321_v22 }
 0x28b   :  { %404 = vmatmul.bf16.vlgmr.msra.gmra.mxu2 %v394_v23 }
 0x30e   :  { %v405_v33 = vpop.f32.mrf.mxu2 }
 0x30f   :  { %v406_v34 = vadd.f32 %v405_v33, %v395_v32  ;;  %v508_v32 = vunpack.c.h.bf16 %v454_v30 }
 0x311   :  { %v963_v24 = vmax.f32 %v406_v34, 0.0 }
 0x313   :  { %v410_v36 = vrot.slane %v963_v24, 4  ;;  %v417_v37 = vmul.f32 %v963_v24, %v963_v24 }
 0x315   :  { %v411_v40 = vadd.f32 %v410_v36, %v963_v24  ;;  %v418_v41 = vrot.slane %v417_v37, 4 }
 0x316   :  { %v407_v0 = vpop.f32.mrf.mxu2 }
 0x317   :  { %v412_v42 = vrot.slane %v411_v40, 2  ;;  %v419_v43 = vadd.f32 %v418_v41, %v417_v37  ;;  %v506_v41 = vunpack.c.h.bf16 %v452_v39 }
 0x319   :  { %v413_v44 = vadd.f32 %v412_v42, %v411_v40  ;;  %v420_v45 = vrot.slane %v419_v43, 2  ;;  %v505_v40 = vunpack.c.l.bf16 %v452_v39 }
 0x31b   :  { %v414_v46 = vrot.slane %v413_v44, 1  ;;  %v421_v47 = vadd.f32 %v420_v45, %v419_v43 }
 0x31d   :  { %v415_v48 = vadd.f32 %v414_v46, %v413_v44  ;;  %v422_v49 = vrot.slane %v421_v47, 1 }
 0x31f   :  { %v416_v50 = vmul.f32 %v415_v48, %v948_v38  ;;  %v423_v51 = vadd.f32 %v422_v49, %v421_v47 }
 0x321   :  { %v424_v53 = vmul.f32 %v423_v51, %v948_v38  ;;  %v425_v54 = vmul.f32 %v416_v50, %v416_v50  ;;  %v460_v51 = vld [vmem:[#allocation2 + $0xb8] sm:$0xff]  }
 0x322   :  { %v513_v52 = vunpack.c.l.bf16 %v460_v51 }
 0x323   :  { %v426_v56 = vsub.f32 %v424_v53, %v425_v54  ;;  %v514_v53 = vunpack.c.h.bf16 %v460_v51  ;;  %v458_v54 = vld [vmem:[#allocation2 + $0xb0] sm:$0xff]  }
 0x324   :  { %v512_v55 = vunpack.c.h.bf16 %v458_v54 }
 0x325   :  { %v427_v57 = vmax.f32 %v426_v56, 0.0 }
 0x327   :  { %v428_v58 = vadd.f32 1e-05, %v427_v57  ;;  %v511_v57 = vunpack.c.l.bf16 %v458_v54 }
 0x329   :  { %853 = vrsqrt.f32 %v428_v58  ;;  %vm435_vm5 = vweird.f32 %v428_v58 }
 0x32f   :  { %v854_v59 = vpop.eup %853 }
 0x330   :  { %v430_v60 = vmul.f32 %v854_v59, %v428_v58  ;;  %vm436_vm4 = vweird.f32 %v854_v59 }
 0x331   :  { %vm437_vm6 = vmor %vm435_vm5, %vm436_vm4 }
 0x332   :  { %v431_v61 = vmul.f32 %v854_v59, %v430_v60  ;;  %v456_v60 = vld [vmem:[#allocation2 + $0xa8] sm:$0xff]  }
 0x334   :  { %v432_v62 = vmul.f32 0.5, %v431_v61  ;;  %v510_v61 = vunpack.c.h.bf16 %v456_v60 }
 0x336   :  { %v433_v63 = vsub.f32 1.5, %v432_v62 }
 0x338   :  { %v434_v1 = vmul.f32 %v854_v59, %v433_v63 }
 0x33a   :  { %v438_v2 = vsel %vm437_vm6, %v854_v59, %v434_v1  ;;  %v509_v1 = vunpack.c.l.bf16 %v456_v60 }
 0x33b   :  { %v439_v3 = vmul.f32 %v749_v28, %v438_v2 }
 0x33d   :  { %v465_v38 = vrot.slane %v439_v3, 1  ;;  %v440_v4 = vmul.f32 %v439_v3, %v416_v50 }
 0x33f   :  { %467 = vxpose.xlu2.b32.start.end [1/1] (short) %v465_v38, 128  ;;  %v442_v5 = vrot.slane %v440_v4, 7 }
 0x341   :  { %v444_v6 = vsub.f32 %v749_v28, %v442_v5 }
 0x343   :  { %v619_v7 = vpack.c.bf16 %v444_v6, %v444_v6 }
 0x345   :  { %v621_v8 = vrot.slane %v619_v7, 1 }
 0x347   :  { %679 = vmatmul.bf16.vlgmr.msra.gmra.mxu3 %v621_v8  ;;  %v450_v8 = vld [vmem:[#allocation2 + $0x90] sm:$0xff]  }
 0x3ca   :  { %v971_v9 = vpop.f32.mrf.mxu3 }
 0x3d2   :  { %v682_v10 = vpop.f32.mrf.mxu3 }
 0x3d3   :  { %v504_v10 = vunpack.c.h.bf16 %v450_v8 }
 0x3d8   :  { %v483_v11 = vpop.trf.xlu2 }
 0x3e0   :  { %v484_v12 = vpop.trf.xlu2 }
 0x3e8   :  { %v485_v13 = vpop.trf.xlu2 }
 0x3f0   :  { %v486_v14 = vpop.trf.xlu2 }
 0x3f8   :  { %v487_v15 = vpop.trf.xlu2 }
 0x400   :  { %v488_v16 = vpop.trf.xlu2 }
 0x408   :  { %v489_v17 = vpop.trf.xlu2 }
 0x410   :  { %v490_v18 = vpop.trf.xlu2 }
 0x418   :  { %v491_v19 = vpop.trf.xlu2 }
 0x419   :  { %557 = vperm.xlu1 %847, %v491_v19  }
 0x420   :  { %v492_v20 = vpop.trf.xlu2 }
 0x421   :  { %562 = vperm.xlu1 %847, %v492_v20  }
 0x428   :  { %v493_v21 = vpop.trf.xlu2 }
 0x429   :  { %547 = vperm.xlu1 %847, %v489_v17   ;;  %567 = vperm.xlu2 %848, %v493_v21  }
 0x430   :  { %v494_v22 = vpop.trf.xlu2 }
 0x431   :  { %552 = vperm.xlu1 %847, %v490_v18  }
 0x438   :  { %v495_v23 = vpop.trf.xlu2 }
 0x439   :  { %537 = vperm.xlu1 %847, %v487_v15  }
 0x440   :  { %v496_v25 = vpop.trf.xlu2 }
 0x441   :  { %542 = vperm.xlu1 %847, %v488_v16  }
 0x448   :  { %v497_v27 = vpop.trf.xlu2 }
 0x449   :  { %572 = vperm.xlu1 %847, %v494_v22   ;;  %v447_v22 = vld [vmem:[#allocation2 + $0x84] sm:$0xf] }
 0x450   :  { %v498_v28 = vpop.trf.xlu2 }
 0x451   :  { %577 = vperm.xlu1 %847, %v495_v23  }
 0x459   :  { %582 = vperm.xlu1 %847, %v496_v25   ;;  %v499_v25 = vunpack.c.h.bf16 %v954_v26 }
 0x461   :  { %587 = vperm.xlu1 %847, %v497_v27   ;;  %v500_v27 = vunpack.c.l.bf16 %v447_v22 }
 0x469   :  { %592 = vperm.xlu1 %847, %v498_v28  }
 0x471   :  { %527 = vperm.xlu1 %847, %v485_v13   ;;  %v448_v13 = vld [vmem:[#allocation2 + $0x88] sm:$0xff]  }
 0x472   :  { %v502_v15 = vunpack.c.h.bf16 %v448_v13  ;;  %v501_v17 = vunpack.c.l.bf16 %v448_v13 }
 0x479   :  { %532 = vperm.xlu1 %847, %v486_v14  }
 0x481   :  { %517 = vperm.xlu1 %847, %v483_v11  }
 0x483   :  { %v568_v3 = vpop.permute.xlu2 %567 }
 0x484   :  { %v605_v6 = vmul.f32 %v568_v3, %v509_v1 }
 0x489   :  { %522 = vperm.xlu1 %847, %v484_v12   ;;  %v503_v12 = vunpack.c.l.bf16 %v450_v8 }
 0x48b   :  { %v558_v29 = vpop.permute.xlu1 %557 }
 0x48c   :  { %v603_v34 = vmul.f32 %v558_v29, %v507_v31 }
 0x493   :  { %v563_v33 = vpop.permute.xlu1 %562 }
 0x494   :  { %v604_v35 = vmul.f32 %v563_v33, %v508_v32  ;;  %v684_v32 = vpack.c.bf16 %v963_v24, %v963_v24  ;;  %v782_v33 = vld [vmem:[%s985_s2 + $0x8] sm:$0x7] }
 0x496   :  { %v615_v36 = vpack.c.bf16 %v604_v35, %v603_v34  ;;  %v681_v34 = vadd.f32 %v782_v33, %v971_v9 }
 0x498   :  { %v685_v26 = vperm.slane %v681_v34, 0 }
 0x49b   :  { %v548_v37 = vpop.permute.xlu1 %547 }
 0x49c   :  { %v601_v42 = vmul.f32 %v548_v37, %v505_v40 }
 0x4a3   :  { %v553_v0 = vpop.permute.xlu1 %552 }
 0x4a4   :  { %v602_v43 = vmul.f32 %v553_v0, %v506_v41 }
 0x4a6   :  { %v614_v44 = vpack.c.bf16 %v602_v43, %v601_v42 }
 0x4ab   :  { %v538_v45 = vpop.permute.xlu1 %537 }
 0x4ac   :  { %v599_v16 = vmul.f32 %v538_v45, %v503_v12 }
 0x4b3   :  { %v543_v46 = vpop.permute.xlu1 %542 }
 0x4b4   :  { %v600_v14 = vmul.f32 %v543_v46, %v504_v10 }
 0x4b6   :  { %v613_v19 = vpack.c.bf16 %v600_v14, %v599_v16 }
 0x4bb   :  { %v573_v47 = vpop.permute.xlu1 %572 }
 0x4bc   :  { %v606_v38 = vmul.f32 %v573_v47, %v510_v61 }
 0x4be   :  { %v616_v7 = vpack.c.bf16 %v606_v38, %v605_v6 }
 0x4c3   :  { %v578_v48 = vpop.permute.xlu1 %577 }
 0x4c4   :  { %v607_v2 = vmul.f32 %v578_v48, %v511_v57 }
 0x4cb   :  { %v583_v49 = vpop.permute.xlu1 %582 }
 0x4cc   :  { %v608_v62 = vmul.f32 %v583_v49, %v512_v55 }
 0x4ce   :  { %v617_v4 = vpack.c.bf16 %v608_v62, %v607_v2 }
 0x4d3   :  { %v588_v50 = vpop.permute.xlu1 %587 }
 0x4d4   :  { %v609_v58 = vmul.f32 %v588_v50, %v513_v52 }
 0x4db   :  { %v593_v56 = vpop.permute.xlu1 %592 }
 0x4dc   :  { %v610_v59 = vmul.f32 %v593_v56, %v514_v53 }
 0x4de   :  { %v618_v63 = vpack.c.bf16 %v610_v59, %v609_v58 }
 0x4e0   :  { %686 = vmatpush.bf16.msrb.mxu0 %v618_v63 }
 0x4e3   :  { %v528_v5 = vpop.permute.xlu1 %527 }
 0x4e4   :  { %687 = vmatpush.bf16.msrb.mxu0 %v617_v4  ;;  %v597_v21 = vmul.f32 %v528_v5, %v501_v17 }
 0x4e8   :  { %688 = vmatpush.bf16.msrb.mxu0 %v616_v7 }
 0x4eb   :  { %v533_v11 = vpop.permute.xlu1 %532 }
 0x4ec   :  { %689 = vmatpush.bf16.msrb.mxu0 %v615_v36  ;;  %v598_v18 = vmul.f32 %v533_v11, %v502_v15 }
 0x4ee   :  { %v612_v23 = vpack.c.bf16 %v598_v18, %v597_v21 }
 0x4f0   :  { %690 = vmatpush.bf16.msrb.mxu0 %v614_v44 }
 0x4f3   :  { %v518_v20 = vpop.permute.xlu1 %517 }
 0x4f4   :  { %691 = vmatpush.bf16.msrb.mxu0 %v613_v19  ;;  %v595_v29 = vmul.f32 %v518_v20, %v499_v25 }
 0x4f8   :  { %692 = vmatpush.bf16.msrb.mxu0 %v612_v23 }
 0x4fb   :  { %v523_v28 = vpop.permute.xlu1 %522 }
 0x4fc   :  { %v596_v30 = vmul.f32 %v523_v28, %v500_v27 }
 0x4fe   :  { %v611_v31 = vpack.c.bf16 %v596_v30, %v595_v29 }
 0x500   :  { %693 = vmatpush.bf16.msrb.mxu0 %v611_v31 }
 0x503   :  { %694 = vmatmul.bf16.vlgmr.msrb.gmra.mxu0 %v684_v32 }
 0x580   :  { %v695_v35 = vpop.f32.mrf.mxu0 }
 0x581   :  { %v696_v36 = vadd.f32 %v695_v35, %v685_v26 }
 0x583   :  { %699 = vst [vmem:[#allocation5] sm:$0xff] %v696_v36 }
 0x584   :  { %710 = dma.vmem_to_hbm [thread:$0]  %s706_s26, 128, %s708_s29, [#allocation4]  }
 0x588   :  { %v697_v24 = vpop.f32.mrf.mxu0 }
 0x589   :  { %905 = dma.done.wait [#allocation4], 128  }
 0x58a   :  { %906 = vsyncadd [#allocation4], 4294967168 }
 0x58b   :  { %715 = vsyncpa [#allocation3], 1 }
 0x58c   :  { %716 = vsyncpa [#allocation4], 1 }

</bundles_post_ra>
